<compile_context>
chip_gen: v5e
topology: v5e:2x2
jax: 0.10.0
libtpu: 0.0.40
codegen_flags: <defaults>
</compile_context>

<pallas_src>
import functools

import jax
import jax.numpy as jnp
from jax import lax
from jax.experimental import pallas as pl
from jax.experimental.pallas import tpu as pltpu


def _attention_kernel(xq_ref, xk_ref, xv_ref,
                      wq_ref, bq_ref, wk_ref, bk_ref,
                      wv_ref, bv_ref, wo_ref, bo_ref,
                      *out_and_scratch,
                      num_heads, head_dim, scale, compute_dtype, with_probs):
    if with_probs:
        out_ref, probs_ref, ctx_scratch = out_and_scratch
    else:
        out_ref, ctx_scratch = out_and_scratch

    cd = compute_dtype
    f32 = jnp.float32

    xq = xq_ref[0]                                   # (tq, E)  compute_dtype
    xk = xk_ref[0]                                   # (Sk, E)
    xv = xv_ref[0]                                   # (Sk, E)

    # Projections: x @ W (weights pre-transposed to (in, out) in the wrapper),
    # f32 accumulation on the MXU, f32 bias add.
    q = jnp.dot(xq, wq_ref[...], preferred_element_type=f32) + bq_ref[...]
    k = jnp.dot(xk, wk_ref[...], preferred_element_type=f32) + bk_ref[...]
    v = jnp.dot(xv, wv_ref[...], preferred_element_type=f32) + bv_ref[...]

    # head_dim**-0.5 and 1/temperature folded into a single constant, applied
    # once to q.
    q = q * scale

    q_c = q.astype(cd)
    k_c = k.astype(cd)
    v_c = v.astype(cd)

    # (tq, Dh) x (Sk, Dh) -> (tq, Sk): contract last dims, no explicit k.T.
    contract_last = (((1,), (1,)), ((), ()))

    for h in range(num_heads):
        lo = h * head_dim
        hi = lo + head_dim
        q_h = q_c[:, lo:hi]
        k_h = k_c[:, lo:hi]
        v_h = v_c[:, lo:hi]

        scores = lax.dot_general(q_h, k_h, contract_last,
                                 preferred_element_type=f32)         # (tq, Sk)

        # Numerically-stable softmax in f32; normalization on the EUP.
        m = jnp.max(scores, axis=-1, keepdims=True)
        e = jnp.exp(scores - m)
        denom = jnp.sum(e, axis=-1, keepdims=True)
        probs = e * pl.reciprocal(denom, approx=True)                # (tq, Sk)

        if with_probs:
            probs_ref[0, h] = probs.astype(probs_ref.dtype)

        ctx_h = jnp.dot(probs.astype(cd), v_h,
                        preferred_element_type=f32)                  # (tq, Dh)
        ctx_scratch[:, lo:hi] = ctx_h

    # Output projection (single dense store of the (tq, E) block).
    ctx = ctx_scratch[...].astype(cd)                                # (tq, H*Dh)
    out = jnp.dot(ctx, wo_ref[...], preferred_element_type=f32) + bo_ref[...]
    out_ref[0] = out.astype(out_ref.dtype)


def chemical_attention_forward(query, key, value, params, num_heads, head_dim,
                               temperature=1.0, need_weights=True,
                               compute_dtype=jnp.bfloat16, block_q=256):
    """Pallas forward. Returns (attn_output, attn_probs) like the PyTorch module
    (attn_probs is None when need_weights=False)."""
    B, Sq, E = query.shape
    _, Sk, _ = key.shape
    total = num_heads * head_dim
    scale = float(head_dim) ** -0.5 / float(temperature)
    cd = compute_dtype

    # One-time layout plumbing in the wrapper: pre-transpose weights to
    # (in_features, out_features) and cast to the MXU compute dtype. Biases and
    # the softmax path stay in f32.
    wq_t = params["wq"].T.astype(cd)     # (E, total)
    wk_t = params["wk"].T.astype(cd)
    wv_t = params["wv"].T.astype(cd)
    wo_t = params["wo"].T.astype(cd)     # (total, E)
    bq = params["bq"].reshape(1, total).astype(jnp.float32)
    bk = params["bk"].reshape(1, total).astype(jnp.float32)
    bv = params["bv"].reshape(1, total).astype(jnp.float32)
    bo = params["bo"].reshape(1, E).astype(jnp.float32)

    xq = query.astype(cd)
    xk = key.astype(cd)
    xv = value.astype(cd)

    # Query tiling: bounds the per-step VMEM working set and creates parallel
    # grid work beyond batch (megacore). Full tile when Sq is small.
    if block_q >= Sq:
        tq = Sq
    else:
        tq = max(8, (block_q // 8) * 8)
    nq = pl.cdiv(Sq, tq)

    kernel = functools.partial(
        _attention_kernel,
        num_heads=num_heads, head_dim=head_dim, scale=scale,
        compute_dtype=cd, with_probs=need_weights)

    q_map = lambda b, i: (b, i, 0)
    kv_map = lambda b, i: (b, 0, 0)
    w_map = lambda b, i: (0, 0)      # constant block index -> no re-DMA per step

    in_specs = [
        pl.BlockSpec((1, tq, E), q_map),       # query
        pl.BlockSpec((1, Sk, E), kv_map),      # key
        pl.BlockSpec((1, Sk, E), kv_map),      # value
        pl.BlockSpec((E, total), w_map),       # wq^T
        pl.BlockSpec((1, total), w_map),       # bq
        pl.BlockSpec((E, total), w_map),       # wk^T
        pl.BlockSpec((1, total), w_map),       # bk
        pl.BlockSpec((E, total), w_map),       # wv^T
        pl.BlockSpec((1, total), w_map),       # bv
        pl.BlockSpec((total, E), w_map),       # wo^T
        pl.BlockSpec((1, E), w_map),           # bo
    ]

    out_spec_o = pl.BlockSpec((1, tq, E), q_map)
    if need_weights:
        out_shape = (jax.ShapeDtypeStruct((B, Sq, E), jnp.float32),
                     jax.ShapeDtypeStruct((B, num_heads, Sq, Sk), jnp.float32))
        out_specs = [out_spec_o,
                     pl.BlockSpec((1, num_heads, tq, Sk),
                                  lambda b, i: (b, 0, i, 0))]
    else:
        out_shape = jax.ShapeDtypeStruct((B, Sq, E), jnp.float32)
        out_specs = out_spec_o

    grid_spec = pltpu.PrefetchScalarGridSpec(
        num_scalar_prefetch=0,
        grid=(B, nq),
        in_specs=in_specs,
        out_specs=out_specs,
        scratch_shapes=[pltpu.VMEM((tq, total), jnp.float32)])

    result = pl.pallas_call(
        kernel,
        out_shape=out_shape,
        grid_spec=grid_spec,
        compiler_params=pltpu.CompilerParams(
            dimension_semantics=("parallel", "parallel")),
    )(xq, xk, xv, wq_t, bq, wk_t, bk, wv_t, bv, wo_t, bo)

    if need_weights:
        out, probs = result
        return out, probs
    return result, None


def make_params(key, embed_dim, num_heads, head_dim):
    """Matches the module's _init_weights: normal(0,1) weights, zero biases.
    Weights stored PyTorch-style as (out_features, in_features)."""
    total = num_heads * head_dim
    k1, k2, k3, k4 = jax.random.split(key, 4)
    return {
        "wq": jax.random.normal(k1, (total, embed_dim), jnp.float32),
        "bq": jnp.zeros((total,), jnp.float32),
        "wk": jax.random.normal(k2, (total, embed_dim), jnp.float32),
        "bk": jnp.zeros((total,), jnp.float32),
        "wv": jax.random.normal(k3, (total, embed_dim), jnp.float32),
        "bv": jnp.zeros((total,), jnp.float32),
        "wo": jax.random.normal(k4, (embed_dim, total), jnp.float32),
        "bo": jnp.zeros((embed_dim,), jnp.float32),
    }


def reference_forward(query, key, value, params, num_heads, head_dim,
                      temperature=1.0, compute_dtype=jnp.bfloat16):
    """Pure-JAX reference mirroring the PyTorch forward (eval mode) with the
    same bf16 cast points as the kernel, so tolerances stay meaningful."""
    B, Sq, E = query.shape
    _, Sk, _ = key.shape
    total = num_heads * head_dim
    scale = float(head_dim) ** -0.5 / float(temperature)
    cd = compute_dtype
    f32 = jnp.float32

    wq_t = params["wq"].T.astype(cd)
    wk_t = params["wk"].T.astype(cd)
    wv_t = params["wv"].T.astype(cd)
    wo_t = params["wo"].T.astype(cd)

    xq = query.astype(cd)
    xk = key.astype(cd)
    xv = value.astype(cd)

    q = jnp.dot(xq, wq_t, preferred_element_type=f32) + params["bq"]
    k = jnp.dot(xk, wk_t, preferred_element_type=f32) + params["bk"]
    v = jnp.dot(xv, wv_t, preferred_element_type=f32) + params["bv"]
    q = q * scale

    qh = q.reshape(B, Sq, num_heads, head_dim).transpose(0, 2, 1, 3).astype(cd)
    kh = k.reshape(B, Sk, num_heads, head_dim).transpose(0, 2, 1, 3).astype(cd)
    vh = v.reshape(B, Sk, num_heads, head_dim).transpose(0, 2, 1, 3).astype(cd)

    scores = jnp.einsum("bhqd,bhkd->bhqk", qh, kh, preferred_element_type=f32)
    probs = jax.nn.softmax(scores, axis=-1)
    ctx = jnp.einsum("bhqk,bhkd->bhqd", probs.astype(cd), vh,
                     preferred_element_type=f32)
    ctx = ctx.transpose(0, 2, 1, 3).reshape(B, Sq, total).astype(cd)
    out = jnp.dot(ctx, wo_t, preferred_element_type=f32) + params["bo"]
    return out, probs


if __name__ == "__main__":
    # Small shapes consistent with the module's forward:
    # batch=2, seq=8, embed_dim=32, num_heads=4, head_dim=8
    B, S, E, H = 2, 8, 32, 4
    Dh = E // H
    key0 = jax.random.PRNGKey(0)
    kq, kk, kv, kp = jax.random.split(key0, 4)

    # 0.25 scale keeps scores O(1) under the module's normal(0,1) weight init,
    # so the bf16-MXU self-test tolerances stay meaningful.
    query = 0.25 * jax.random.normal(kq, (B, S, E), jnp.float32)
    key_in = 0.25 * jax.random.normal(kk, (B, S, E), jnp.float32)
    value = 0.25 * jax.random.normal(kv, (B, S, E), jnp.float32)
    params = make_params(kp, embed_dim=E, num_heads=H, head_dim=Dh)

    out, probs = chemical_attention_forward(query, key_in, value, params,
                                            num_heads=H, head_dim=Dh,
                                            temperature=1.0, need_weights=True)
    out = jax.block_until_ready(out)
    probs = jax.block_until_ready(probs)

    ref_out, ref_probs = reference_forward(query, key_in, value, params,
                                           num_heads=H, head_dim=Dh,
                                           temperature=1.0)

    assert out.shape == (B, S, E)
    assert probs.shape == (B, H, S, S)
    assert bool(jnp.allclose(out, ref_out, atol=5e-2, rtol=2e-2)), \
        float(jnp.max(jnp.abs(out - ref_out)))
    assert bool(jnp.allclose(probs, ref_probs, atol=5e-3, rtol=1e-2)), \
        float(jnp.max(jnp.abs(probs - ref_probs)))
    # attention probabilities form a valid distribution over keys
    assert bool(jnp.allclose(jnp.sum(probs, axis=-1), 1.0, atol=5e-3))

    # need_weights=False path: skips the (B,H,Sq,Sk) HBM write stream entirely.
    out_nw, probs_nw = chemical_attention_forward(query, key_in, value, params,
                                                  num_heads=H, head_dim=Dh,
                                                  temperature=1.0,
                                                  need_weights=False)
    out_nw = jax.block_until_ready(out_nw)
    assert probs_nw is None
    assert bool(jnp.allclose(out_nw, out, atol=1e-5, rtol=1e-5))

    print("KERNEL_OK")
</pallas_src>

<mosaic_0001>
module attributes {stable_mosaic.version = 11 : i64} {
  func.func @_attention_kernel(%arg0: i32, %arg1: i32, %arg2: memref<1x8x32xbf16, #tpu.memory_space<vmem>>, %arg3: memref<1x8x32xbf16, #tpu.memory_space<vmem>>, %arg4: memref<1x8x32xbf16, #tpu.memory_space<vmem>>, %arg5: memref<32x32xbf16, #tpu.memory_space<vmem>>, %arg6: memref<1x32xf32, #tpu.memory_space<vmem>>, %arg7: memref<32x32xbf16, #tpu.memory_space<vmem>>, %arg8: memref<1x32xf32, #tpu.memory_space<vmem>>, %arg9: memref<32x32xbf16, #tpu.memory_space<vmem>>, %arg10: memref<1x32xf32, #tpu.memory_space<vmem>>, %arg11: memref<32x32xbf16, #tpu.memory_space<vmem>>, %arg12: memref<1x32xf32, #tpu.memory_space<vmem>>, %arg13: memref<1x8x32xf32, #tpu.memory_space<vmem>>, %arg14: memref<1x4x8x8xf32, #tpu.memory_space<vmem>>, %arg15: memref<8x32xf32, #tpu.memory_space<vmem>>) attributes {dimension_semantics = [#tpu.dimension_semantics<parallel>, #tpu.dimension_semantics<parallel>], iteration_bounds = array<i64: 2, 1>, scalar_prefetch = 0 : i64, scratch_operands = 1 : i64, tpu.core_type = #tpu.core_type<tc>, window_params = [{transform_indices = @transform_0, window_bounds = array<i64: 1, 8, 32>}, {transform_indices = @transform_1, window_bounds = array<i64: 1, 8, 32>}, {transform_indices = @transform_2, window_bounds = array<i64: 1, 8, 32>}, {pipeline_mode = #tpu.pipeline_mode<synchronous>, transform_indices = @transform_3, window_bounds = array<i64: 32, 32>}, {pipeline_mode = #tpu.pipeline_mode<synchronous>, transform_indices = @transform_4, window_bounds = array<i64: 1, 32>}, {pipeline_mode = #tpu.pipeline_mode<synchronous>, transform_indices = @transform_5, window_bounds = array<i64: 32, 32>}, {pipeline_mode = #tpu.pipeline_mode<synchronous>, transform_indices = @transform_6, window_bounds = array<i64: 1, 32>}, {pipeline_mode = #tpu.pipeline_mode<synchronous>, transform_indices = @transform_7, window_bounds = array<i64: 32, 32>}, {pipeline_mode = #tpu.pipeline_mode<synchronous>, transform_indices = @transform_8, window_bounds = array<i64: 1, 32>}, {pipeline_mode = #tpu.pipeline_mode<synchronous>, transform_indices = @transform_9, window_bounds = array<i64: 32, 32>}, {pipeline_mode = #tpu.pipeline_mode<synchronous>, transform_indices = @transform_10, window_bounds = array<i64: 1, 32>}, {transform_indices = @transform_11, window_bounds = array<i64: 1, 8, 32>}, {transform_indices = @transform_12, window_bounds = array<i64: 1, 4, 8, 8>}]} {
    %c0 = arith.constant 0 : index
    %c0_0 = arith.constant 0 : index
    %c0_1 = arith.constant 0 : index
    %0 = vector.load %arg2[%c0, %c0_0, %c0_1] : memref<1x8x32xbf16, #tpu.memory_space<vmem>>, vector<1x8x32xbf16>
    %1 = vector.shape_cast %0 : vector<1x8x32xbf16> to vector<8x32xbf16>
    %c0_2 = arith.constant 0 : index
    %c0_3 = arith.constant 0 : index
    %c0_4 = arith.constant 0 : index
    %2 = vector.load %arg3[%c0_2, %c0_3, %c0_4] : memref<1x8x32xbf16, #tpu.memory_space<vmem>>, vector<1x8x32xbf16>
    %3 = vector.shape_cast %2 : vector<1x8x32xbf16> to vector<8x32xbf16>
    %c0_5 = arith.constant 0 : index
    %c0_6 = arith.constant 0 : index
    %c0_7 = arith.constant 0 : index
    %4 = vector.load %arg4[%c0_5, %c0_6, %c0_7] : memref<1x8x32xbf16, #tpu.memory_space<vmem>>, vector<1x8x32xbf16>
    %5 = vector.shape_cast %4 : vector<1x8x32xbf16> to vector<8x32xbf16>
    %c0_8 = arith.constant 0 : index
    %c0_9 = arith.constant 0 : index
    %6 = vector.load %arg5[%c0_8, %c0_9] : memref<32x32xbf16, #tpu.memory_space<vmem>>, vector<32x32xbf16>
    %cst = arith.constant dense<0.000000e+00> : vector<8x32xf32>
    %7 = tpu.matmul %1, %6, %cst {dimension_numbers = #tpu.dot_dimension_numbers<[1], [0], [0], [1], [0, 0, 1, 1], [], []>} : vector<8x32xbf16>, vector<32x32xbf16>, vector<8x32xf32> -> vector<8x32xf32>
    %c0_10 = arith.constant 0 : index
    %c0_11 = arith.constant 0 : index
    %8 = vector.load %arg6[%c0_10, %c0_11] : memref<1x32xf32, #tpu.memory_space<vmem>>, vector<1x32xf32>
    %9 = vector.broadcast %8 : vector<1x32xf32> to vector<8x32xf32>
    %10 = arith.addf %7, %9 : vector<8x32xf32>
    %c0_12 = arith.constant 0 : index
    %c0_13 = arith.constant 0 : index
    %11 = vector.load %arg7[%c0_12, %c0_13] : memref<32x32xbf16, #tpu.memory_space<vmem>>, vector<32x32xbf16>
    %cst_14 = arith.constant dense<0.000000e+00> : vector<8x32xf32>
    %12 = tpu.matmul %3, %11, %cst_14 {dimension_numbers = #tpu.dot_dimension_numbers<[1], [0], [0], [1], [0, 0, 1, 1], [], []>} : vector<8x32xbf16>, vector<32x32xbf16>, vector<8x32xf32> -> vector<8x32xf32>
    %c0_15 = arith.constant 0 : index
    %c0_16 = arith.constant 0 : index
    %13 = vector.load %arg8[%c0_15, %c0_16] : memref<1x32xf32, #tpu.memory_space<vmem>>, vector<1x32xf32>
    %14 = vector.broadcast %13 : vector<1x32xf32> to vector<8x32xf32>
    %15 = arith.addf %12, %14 : vector<8x32xf32>
    %c0_17 = arith.constant 0 : index
    %c0_18 = arith.constant 0 : index
    %16 = vector.load %arg9[%c0_17, %c0_18] : memref<32x32xbf16, #tpu.memory_space<vmem>>, vector<32x32xbf16>
    %cst_19 = arith.constant dense<0.000000e+00> : vector<8x32xf32>
    %17 = tpu.matmul %5, %16, %cst_19 {dimension_numbers = #tpu.dot_dimension_numbers<[1], [0], [0], [1], [0, 0, 1, 1], [], []>} : vector<8x32xbf16>, vector<32x32xbf16>, vector<8x32xf32> -> vector<8x32xf32>
    %c0_20 = arith.constant 0 : index
    %c0_21 = arith.constant 0 : index
    %18 = vector.load %arg10[%c0_20, %c0_21] : memref<1x32xf32, #tpu.memory_space<vmem>>, vector<1x32xf32>
    %19 = vector.broadcast %18 : vector<1x32xf32> to vector<8x32xf32>
    %20 = arith.addf %17, %19 : vector<8x32xf32>
    %cst_22 = arith.constant 0.353553385 : f32
    %21 = vector.broadcast %cst_22 : f32 to vector<8x32xf32>
    %22 = arith.mulf %10, %21 : vector<8x32xf32>
    %23 = arith.truncf %22 : vector<8x32xf32> to vector<8x32xbf16>
    %24 = arith.truncf %15 : vector<8x32xf32> to vector<8x32xbf16>
    %25 = arith.truncf %20 : vector<8x32xf32> to vector<8x32xbf16>
    %26 = vector.extract_strided_slice %23 {offsets = [0, 0], sizes = [8, 8], strides = [1, 1]} : vector<8x32xbf16> to vector<8x8xbf16>
    %27 = vector.extract_strided_slice %24 {offsets = [0, 0], sizes = [8, 8], strides = [1, 1]} : vector<8x32xbf16> to vector<8x8xbf16>
    %28 = vector.extract_strided_slice %25 {offsets = [0, 0], sizes = [8, 8], strides = [1, 1]} : vector<8x32xbf16> to vector<8x8xbf16>
    %cst_23 = arith.constant dense<0.000000e+00> : vector<8x8xf32>
    %29 = tpu.matmul %26, %27, %cst_23 {dimension_numbers = #tpu.dot_dimension_numbers<[1], [1], [0], [0], [0, 0, 1, 0], [], []>} : vector<8x8xbf16>, vector<8x8xbf16>, vector<8x8xf32> -> vector<8x8xf32>
    %cst_24 = arith.constant dense<0xFF800000> : vector<8xf32>
    %30 = vector.multi_reduction <maximumf>, %29, %cst_24 [1] : vector<8x8xf32> to vector<8xf32>
    %31 = vector.shape_cast %30 : vector<8xf32> to vector<8x1xf32>
    %32 = vector.broadcast %31 : vector<8x1xf32> to vector<8x8xf32>
    %33 = arith.subf %29, %32 : vector<8x8xf32>
    %34 = math.exp %33 : vector<8x8xf32>
    %cst_25 = arith.constant dense<0.000000e+00> : vector<8xf32>
    %35 = vector.multi_reduction <add>, %34, %cst_25 [1] : vector<8x8xf32> to vector<8xf32>
    %36 = vector.shape_cast %35 : vector<8xf32> to vector<8x1xf32>
    %37 = tpu.reciprocal %36 {approx = true} : vector<8x1xf32> -> vector<8x1xf32>
    %38 = vector.broadcast %37 : vector<8x1xf32> to vector<8x8xf32>
    %39 = arith.mulf %34, %38 : vector<8x8xf32>
    %c0_26 = arith.constant 0 : index
    %c0_27 = arith.constant 0 : index
    %c0_28 = arith.constant 0 : index
    %c0_29 = arith.constant 0 : index
    %40 = vector.load %arg14[%c0_26, %c0_27, %c0_28, %c0_29] : memref<1x4x8x8xf32, #tpu.memory_space<vmem>>, vector<1x1x8x8xf32>
    %41 = vector.shape_cast %40 : vector<1x1x8x8xf32> to vector<8x8xf32>
    %42 = vector.shape_cast %39 : vector<8x8xf32> to vector<1x1x8x8xf32>
    tpu.vector_store %arg14[%c0_26, %c0_27, %c0_28, %c0_29], %42 {strides = array<i32>} : memref<1x4x8x8xf32, #tpu.memory_space<vmem>>, vector<1x1x8x8xf32>,
    %43 = arith.truncf %39 : vector<8x8xf32> to vector<8x8xbf16>
    %cst_30 = arith.constant dense<0.000000e+00> : vector<8x8xf32>
    %44 = tpu.matmul %43, %28, %cst_30 {dimension_numbers = #tpu.dot_dimension_numbers<[1], [0], [0], [1], [0, 0, 1, 1], [], []>} : vector<8x8xbf16>, vector<8x8xbf16>, vector<8x8xf32> -> vector<8x8xf32>
    %c0_31 = arith.constant 0 : index
    %c0_32 = arith.constant 0 : index
    %45 = vector.load %arg15[%c0_31, %c0_32] : memref<8x32xf32, #tpu.memory_space<vmem>>, vector<8x8xf32>
    tpu.vector_store %arg15[%c0_31, %c0_32], %44 {strides = array<i32>} : memref<8x32xf32, #tpu.memory_space<vmem>>, vector<8x8xf32>,
    %46 = vector.extract_strided_slice %23 {offsets = [0, 8], sizes = [8, 8], strides = [1, 1]} : vector<8x32xbf16> to vector<8x8xbf16>
    %47 = vector.extract_strided_slice %24 {offsets = [0, 8], sizes = [8, 8], strides = [1, 1]} : vector<8x32xbf16> to vector<8x8xbf16>
    %48 = vector.extract_strided_slice %25 {offsets = [0, 8], sizes = [8, 8], strides = [1, 1]} : vector<8x32xbf16> to vector<8x8xbf16>
    %cst_33 = arith.constant dense<0.000000e+00> : vector<8x8xf32>
    %49 = tpu.matmul %46, %47, %cst_33 {dimension_numbers = #tpu.dot_dimension_numbers<[1], [1], [0], [0], [0, 0, 1, 0], [], []>} : vector<8x8xbf16>, vector<8x8xbf16>, vector<8x8xf32> -> vector<8x8xf32>
    %cst_34 = arith.constant dense<0xFF800000> : vector<8xf32>
    %50 = vector.multi_reduction <maximumf>, %49, %cst_34 [1] : vector<8x8xf32> to vector<8xf32>
    %51 = vector.shape_cast %50 : vector<8xf32> to vector<8x1xf32>
    %52 = vector.broadcast %51 : vector<8x1xf32> to vector<8x8xf32>
    %53 = arith.subf %49, %52 : vector<8x8xf32>
    %54 = math.exp %53 : vector<8x8xf32>
    %cst_35 = arith.constant dense<0.000000e+00> : vector<8xf32>
    %55 = vector.multi_reduction <add>, %54, %cst_35 [1] : vector<8x8xf32> to vector<8xf32>
    %56 = vector.shape_cast %55 : vector<8xf32> to vector<8x1xf32>
    %57 = tpu.reciprocal %56 {approx = true} : vector<8x1xf32> -> vector<8x1xf32>
    %58 = vector.broadcast %57 : vector<8x1xf32> to vector<8x8xf32>
    %59 = arith.mulf %54, %58 : vector<8x8xf32>
    %c0_36 = arith.constant 0 : index
    %c1 = arith.constant 1 : index
    %c0_37 = arith.constant 0 : index
    %c0_38 = arith.constant 0 : index
    %60 = vector.load %arg14[%c0_36, %c1, %c0_37, %c0_38] : memref<1x4x8x8xf32, #tpu.memory_space<vmem>>, vector<1x1x8x8xf32>
    %61 = vector.shape_cast %60 : vector<1x1x8x8xf32> to vector<8x8xf32>
    %62 = vector.shape_cast %59 : vector<8x8xf32> to vector<1x1x8x8xf32>
    tpu.vector_store %arg14[%c0_36, %c1, %c0_37, %c0_38], %62 {strides = array<i32>} : memref<1x4x8x8xf32, #tpu.memory_space<vmem>>, vector<1x1x8x8xf32>,
    %63 = arith.truncf %59 : vector<8x8xf32> to vector<8x8xbf16>
    %cst_39 = arith.constant dense<0.000000e+00> : vector<8x8xf32>
    %64 = tpu.matmul %63, %48, %cst_39 {dimension_numbers = #tpu.dot_dimension_numbers<[1], [0], [0], [1], [0, 0, 1, 1], [], []>} : vector<8x8xbf16>, vector<8x8xbf16>, vector<8x8xf32> -> vector<8x8xf32>
    %c0_40 = arith.constant 0 : index
    %c8 = arith.constant 8 : index
    %65 = vector.load %arg15[%c0_40, %c8] : memref<8x32xf32, #tpu.memory_space<vmem>>, vector<8x8xf32>
    tpu.vector_store %arg15[%c0_40, %c8], %64 {strides = array<i32>} : memref<8x32xf32, #tpu.memory_space<vmem>>, vector<8x8xf32>,
    %66 = vector.extract_strided_slice %23 {offsets = [0, 16], sizes = [8, 8], strides = [1, 1]} : vector<8x32xbf16> to vector<8x8xbf16>
    %67 = vector.extract_strided_slice %24 {offsets = [0, 16], sizes = [8, 8], strides = [1, 1]} : vector<8x32xbf16> to vector<8x8xbf16>
    %68 = vector.extract_strided_slice %25 {offsets = [0, 16], sizes = [8, 8], strides = [1, 1]} : vector<8x32xbf16> to vector<8x8xbf16>
    %cst_41 = arith.constant dense<0.000000e+00> : vector<8x8xf32>
    %69 = tpu.matmul %66, %67, %cst_41 {dimension_numbers = #tpu.dot_dimension_numbers<[1], [1], [0], [0], [0, 0, 1, 0], [], []>} : vector<8x8xbf16>, vector<8x8xbf16>, vector<8x8xf32> -> vector<8x8xf32>
    %cst_42 = arith.constant dense<0xFF800000> : vector<8xf32>
    %70 = vector.multi_reduction <maximumf>, %69, %cst_42 [1] : vector<8x8xf32> to vector<8xf32>
    %71 = vector.shape_cast %70 : vector<8xf32> to vector<8x1xf32>
    %72 = vector.broadcast %71 : vector<8x1xf32> to vector<8x8xf32>
    %73 = arith.subf %69, %72 : vector<8x8xf32>
    %74 = math.exp %73 : vector<8x8xf32>
    %cst_43 = arith.constant dense<0.000000e+00> : vector<8xf32>
    %75 = vector.multi_reduction <add>, %74, %cst_43 [1] : vector<8x8xf32> to vector<8xf32>
    %76 = vector.shape_cast %75 : vector<8xf32> to vector<8x1xf32>
    %77 = tpu.reciprocal %76 {approx = true} : vector<8x1xf32> -> vector<8x1xf32>
    %78 = vector.broadcast %77 : vector<8x1xf32> to vector<8x8xf32>
    %79 = arith.mulf %74, %78 : vector<8x8xf32>
    %c0_44 = arith.constant 0 : index
    %c2 = arith.constant 2 : index
    %c0_45 = arith.constant 0 : index
    %c0_46 = arith.constant 0 : index
    %80 = vector.load %arg14[%c0_44, %c2, %c0_45, %c0_46] : memref<1x4x8x8xf32, #tpu.memory_space<vmem>>, vector<1x1x8x8xf32>
    %81 = vector.shape_cast %80 : vector<1x1x8x8xf32> to vector<8x8xf32>
    %82 = vector.shape_cast %79 : vector<8x8xf32> to vector<1x1x8x8xf32>
    tpu.vector_store %arg14[%c0_44, %c2, %c0_45, %c0_46], %82 {strides = array<i32>} : memref<1x4x8x8xf32, #tpu.memory_space<vmem>>, vector<1x1x8x8xf32>,
    %83 = arith.truncf %79 : vector<8x8xf32> to vector<8x8xbf16>
    %cst_47 = arith.constant dense<0.000000e+00> : vector<8x8xf32>
    %84 = tpu.matmul %83, %68, %cst_47 {dimension_numbers = #tpu.dot_dimension_numbers<[1], [0], [0], [1], [0, 0, 1, 1], [], []>} : vector<8x8xbf16>, vector<8x8xbf16>, vector<8x8xf32> -> vector<8x8xf32>
    %c0_48 = arith.constant 0 : index
    %c16 = arith.constant 16 : index
    %85 = vector.load %arg15[%c0_48, %c16] : memref<8x32xf32, #tpu.memory_space<vmem>>, vector<8x8xf32>
    tpu.vector_store %arg15[%c0_48, %c16], %84 {strides = array<i32>} : memref<8x32xf32, #tpu.memory_space<vmem>>, vector<8x8xf32>,
    %86 = vector.extract_strided_slice %23 {offsets = [0, 24], sizes = [8, 8], strides = [1, 1]} : vector<8x32xbf16> to vector<8x8xbf16>
    %87 = vector.extract_strided_slice %24 {offsets = [0, 24], sizes = [8, 8], strides = [1, 1]} : vector<8x32xbf16> to vector<8x8xbf16>
    %88 = vector.extract_strided_slice %25 {offsets = [0, 24], sizes = [8, 8], strides = [1, 1]} : vector<8x32xbf16> to vector<8x8xbf16>
    %cst_49 = arith.constant dense<0.000000e+00> : vector<8x8xf32>
    %89 = tpu.matmul %86, %87, %cst_49 {dimension_numbers = #tpu.dot_dimension_numbers<[1], [1], [0], [0], [0, 0, 1, 0], [], []>} : vector<8x8xbf16>, vector<8x8xbf16>, vector<8x8xf32> -> vector<8x8xf32>
    %cst_50 = arith.constant dense<0xFF800000> : vector<8xf32>
    %90 = vector.multi_reduction <maximumf>, %89, %cst_50 [1] : vector<8x8xf32> to vector<8xf32>
    %91 = vector.shape_cast %90 : vector<8xf32> to vector<8x1xf32>
    %92 = vector.broadcast %91 : vector<8x1xf32> to vector<8x8xf32>
    %93 = arith.subf %89, %92 : vector<8x8xf32>
    %94 = math.exp %93 : vector<8x8xf32>
    %cst_51 = arith.constant dense<0.000000e+00> : vector<8xf32>
    %95 = vector.multi_reduction <add>, %94, %cst_51 [1] : vector<8x8xf32> to vector<8xf32>
    %96 = vector.shape_cast %95 : vector<8xf32> to vector<8x1xf32>
    %97 = tpu.reciprocal %96 {approx = true} : vector<8x1xf32> -> vector<8x1xf32>
    %98 = vector.broadcast %97 : vector<8x1xf32> to vector<8x8xf32>
    %99 = arith.mulf %94, %98 : vector<8x8xf32>
    %c0_52 = arith.constant 0 : index
    %c3 = arith.constant 3 : index
    %c0_53 = arith.constant 0 : index
    %c0_54 = arith.constant 0 : index
    %100 = vector.load %arg14[%c0_52, %c3, %c0_53, %c0_54] : memref<1x4x8x8xf32, #tpu.memory_space<vmem>>, vector<1x1x8x8xf32>
    %101 = vector.shape_cast %100 : vector<1x1x8x8xf32> to vector<8x8xf32>
    %102 = vector.shape_cast %99 : vector<8x8xf32> to vector<1x1x8x8xf32>
    tpu.vector_store %arg14[%c0_52, %c3, %c0_53, %c0_54], %102 {strides = array<i32>} : memref<1x4x8x8xf32, #tpu.memory_space<vmem>>, vector<1x1x8x8xf32>,
    %103 = arith.truncf %99 : vector<8x8xf32> to vector<8x8xbf16>
    %cst_55 = arith.constant dense<0.000000e+00> : vector<8x8xf32>
    %104 = tpu.matmul %103, %88, %cst_55 {dimension_numbers = #tpu.dot_dimension_numbers<[1], [0], [0], [1], [0, 0, 1, 1], [], []>} : vector<8x8xbf16>, vector<8x8xbf16>, vector<8x8xf32> -> vector<8x8xf32>
    %c0_56 = arith.constant 0 : index
    %c24 = arith.constant 24 : index
    %105 = vector.load %arg15[%c0_56, %c24] : memref<8x32xf32, #tpu.memory_space<vmem>>, vector<8x8xf32>
    tpu.vector_store %arg15[%c0_56, %c24], %104 {strides = array<i32>} : memref<8x32xf32, #tpu.memory_space<vmem>>, vector<8x8xf32>,
    %c0_57 = arith.constant 0 : index
    %c0_58 = arith.constant 0 : index
    %106 = vector.load %arg15[%c0_57, %c0_58] : memref<8x32xf32, #tpu.memory_space<vmem>>, vector<8x32xf32>
    %107 = arith.truncf %106 : vector<8x32xf32> to vector<8x32xbf16>
    %c0_59 = arith.constant 0 : index
    %c0_60 = arith.constant 0 : index
    %108 = vector.load %arg11[%c0_59, %c0_60] : memref<32x32xbf16, #tpu.memory_space<vmem>>, vector<32x32xbf16>
    %cst_61 = arith.constant dense<0.000000e+00> : vector<8x32xf32>
    %109 = tpu.matmul %107, %108, %cst_61 {dimension_numbers = #tpu.dot_dimension_numbers<[1], [0], [0], [1], [0, 0, 1, 1], [], []>} : vector<8x32xbf16>, vector<32x32xbf16>, vector<8x32xf32> -> vector<8x32xf32>
    %c0_62 = arith.constant 0 : index
    %c0_63 = arith.constant 0 : index
    %110 = vector.load %arg12[%c0_62, %c0_63] : memref<1x32xf32, #tpu.memory_space<vmem>>, vector<1x32xf32>
    %111 = vector.broadcast %110 : vector<1x32xf32> to vector<8x32xf32>
    %112 = arith.addf %109, %111 : vector<8x32xf32>
    %c0_64 = arith.constant 0 : index
    %c0_65 = arith.constant 0 : index
    %c0_66 = arith.constant 0 : index
    %113 = vector.load %arg13[%c0_64, %c0_65, %c0_66] : memref<1x8x32xf32, #tpu.memory_space<vmem>>, vector<1x8x32xf32>
    %114 = vector.shape_cast %113 : vector<1x8x32xf32> to vector<8x32xf32>
    %115 = vector.shape_cast %112 : vector<8x32xf32> to vector<1x8x32xf32>
    tpu.vector_store %arg13[%c0_64, %c0_65, %c0_66], %115 {strides = array<i32>} : memref<1x8x32xf32, #tpu.memory_space<vmem>>, vector<1x8x32xf32>,
    return
  }
  func.func @transform_0(%arg0: i32, %arg1: i32) -> (i32, i32, i32) {
    %c0_i32 = arith.constant 0 : i32
    %c0_i32_0 = arith.constant 0 : i32
    return %arg0, %arg1, %c0_i32 : i32, i32, i32
  }
  func.func @transform_1(%arg0: i32, %arg1: i32) -> (i32, i32, i32) {
    %c0_i32 = arith.constant 0 : i32
    %c0_i32_0 = arith.constant 0 : i32
    %c0_i32_1 = arith.constant 0 : i32
    return %arg0, %c0_i32, %c0_i32_0 : i32, i32, i32
  }
  func.func @transform_2(%arg0: i32, %arg1: i32) -> (i32, i32, i32) {
    %c0_i32 = arith.constant 0 : i32
    %c0_i32_0 = arith.constant 0 : i32
    %c0_i32_1 = arith.constant 0 : i32
    return %arg0, %c0_i32, %c0_i32_0 : i32, i32, i32
  }
  func.func @transform_3(%arg0: i32, %arg1: i32) -> (i32, i32) {
    %c0_i32 = arith.constant 0 : i32
    %c0_i32_0 = arith.constant 0 : i32
    %c0_i32_1 = arith.constant 0 : i32
    return %c0_i32, %c0_i32_0 : i32, i32
  }
  func.func @transform_4(%arg0: i32, %arg1: i32) -> (i32, i32) {
    %c0_i32 = arith.constant 0 : i32
    %c0_i32_0 = arith.constant 0 : i32
    %c0_i32_1 = arith.constant 0 : i32
    return %c0_i32, %c0_i32_0 : i32, i32
  }
  func.func @transform_5(%arg0: i32, %arg1: i32) -> (i32, i32) {
    %c0_i32 = arith.constant 0 : i32
    %c0_i32_0 = arith.constant 0 : i32
    %c0_i32_1 = arith.constant 0 : i32
    return %c0_i32, %c0_i32_0 : i32, i32
  }
  func.func @transform_6(%arg0: i32, %arg1: i32) -> (i32, i32) {
    %c0_i32 = arith.constant 0 : i32
    %c0_i32_0 = arith.constant 0 : i32
    %c0_i32_1 = arith.constant 0 : i32
    return %c0_i32, %c0_i32_0 : i32, i32
  }
  func.func @transform_7(%arg0: i32, %arg1: i32) -> (i32, i32) {
    %c0_i32 = arith.constant 0 : i32
    %c0_i32_0 = arith.constant 0 : i32
    %c0_i32_1 = arith.constant 0 : i32
    return %c0_i32, %c0_i32_0 : i32, i32
  }
  func.func @transform_8(%arg0: i32, %arg1: i32) -> (i32, i32) {
    %c0_i32 = arith.constant 0 : i32
    %c0_i32_0 = arith.constant 0 : i32
    %c0_i32_1 = arith.constant 0 : i32
    return %c0_i32, %c0_i32_0 : i32, i32
  }
  func.func @transform_9(%arg0: i32, %arg1: i32) -> (i32, i32) {
    %c0_i32 = arith.constant 0 : i32
    %c0_i32_0 = arith.constant 0 : i32
    %c0_i32_1 = arith.constant 0 : i32
    return %c0_i32, %c0_i32_0 : i32, i32
  }
  func.func @transform_10(%arg0: i32, %arg1: i32) -> (i32, i32) {
    %c0_i32 = arith.constant 0 : i32
    %c0_i32_0 = arith.constant 0 : i32
    %c0_i32_1 = arith.constant 0 : i32
    return %c0_i32, %c0_i32_0 : i32, i32
  }
  func.func @transform_11(%arg0: i32, %arg1: i32) -> (i32, i32, i32) {
    %c0_i32 = arith.constant 0 : i32
    %c0_i32_0 = arith.constant 0 : i32
    return %arg0, %arg1, %c0_i32 : i32, i32, i32
  }
  func.func @transform_12(%arg0: i32, %arg1: i32) -> (i32, i32, i32, i32) {
    %c0_i32 = arith.constant 0 : i32
    %c0_i32_0 = arith.constant 0 : i32
    %c0_i32_1 = arith.constant 0 : i32
    return %arg0, %c0_i32, %arg1, %c0_i32_0 : i32, i32, i32, i32
  }
}

</mosaic_0001>

<bundles_post_ra>
// kernel: tpu_custom_call.1
= control target key start
LH: loop header
LB: loop body
LE: loop exit
PB: predicated region body
PF: predicated region fallthrough
CT: control target
= control target key end

     0   :  { %s2203_s0 = inlined_call_operand.hbm [shape: bf16[2,8,32], index: 0, kind: input, shape index: {}]   ;;  %s2204_s1 = inlined_call_operand.hbm [shape: bf16[2,8,32], index: 1, kind: input, shape index: {}]   ;;  %s2205_s2 = inlined_call_operand.hbm [shape: bf16[2,8,32], index: 2, kind: input, shape index: {}]   ;;  %s2206_s3 = inlined_call_operand.hbm [shape: bf16[32,32], index: 3, kind: input, shape index: {}]   ;;  %s2207_s4 = inlined_call_operand.vmem [shape: f32[1,32], index: 4, kind: input, shape index: {}]   ;;  %s2208_s5 = inlined_call_operand.hbm [shape: bf16[32,32], index: 5, kind: input, shape index: {}]   ;;  %s2209_s6 = inlined_call_operand.vmem [shape: f32[1,32], index: 6, kind: input, shape index: {}]   ;;  %s2210_s7 = inlined_call_operand.hbm [shape: bf16[32,32], index: 7, kind: input, shape index: {}]   ;;  %s2211_s8 = inlined_call_operand.vmem [shape: f32[1,32], index: 8, kind: input, shape index: {}]   ;;  %s2212_s9 = inlined_call_operand.hbm [shape: bf16[32,32], index: 9, kind: input, shape index: {}]   ;;  %s2213_s10 = inlined_call_operand.vmem [shape: f32[1,32], index: 10, kind: input, shape index: {}]   ;;  %s2214_s11 = inlined_call_operand.hbm [shape: f32[2,8,32], index: 11, kind: output, shape index: {0}]   ;;  %s2215_s12 = inlined_call_operand.hbm [shape: f32[2,4,8,8], index: 12, kind: output, shape index: {1}]  }
   0x1   :  { %2229 = sst [smem:[#allocation30_spill]] %s2203_s0 }
   0x2   :  { %2230 = sst [smem:[#allocation31_spill]] %s2204_s1 }
   0x3   :  { %2231 = sst [smem:[#allocation32_spill]] %s2206_s3 }
   0x4   :  { %2232 = sst [smem:[#allocation33_spill]] %s2208_s5 }
   0x5   :  { %2233 = sst [smem:[#allocation34_spill]] %s2210_s7 }
   0x6   :  { %2234 = sst [smem:[#allocation35_spill]] %s2212_s9 }
   0x7   :  { %2235 = sst [smem:[#allocation36_spill]] %s2213_s10 }
   0x8   :  { %2236 = sst [smem:[#allocation37_spill]] %s2214_s11 }
   0x9   :  { %2237 = sst [smem:[#allocation38_spill]] %s2215_s12 }
   0xa   :  { %18 = vsyncpa [#allocation4], 0 }
   0xb   :  { %20 = vsyncpa [#allocation4 + $0x1], 0 }
   0xc   :  { %21 = vsyncpa [#allocation7], 0 }
   0xd   :  { %23 = vsyncpa [#allocation7 + $0x1], 0 }
   0xe   :  { %24 = vsyncpa [#allocation10], 0 }
   0xf   :  { %25 = vsyncpa [#allocation13], 0 }
  0x10   :  { %26 = vsyncpa [#allocation5], 0 }
  0x11   :  { %28 = vsyncpa [#allocation5 + $0x1], 0 }
  0x12   :  { %29 = vsyncpa [#allocation17], 0 }
  0x13   :  { %31 = vsyncpa [#allocation17 + $0x1], 0  ;;  %s1899_s21 = smov 0   ;;  %s1901_s22 = smov 0  }
  0x14   :  { %s1903_s23 = smov 0   ;;  %s1905_s24 = smov 0  }
  0x15   :  { %s1907_s25 = smov 0   ;;  %s1909_s26 = smov 0  }
  0x16 LB: > { %2238 = sst [smem:[#allocation24_spill]] %s1799_s21  ;;  %s1930_s27 = sadd.s32 4294967295, %s1819_s26   ;;  %s1819_s26 = sphi %s1909_s26, %s37_s26   ;;  %s1815_s25 = sphi %s1907_s25, %s2268_s25   ;;  %s1811_s24 = sphi %s1905_s24, %s2267_s24   ;;  %s1807_s23 = sphi %s1903_s23, %s2271_s23   ;;  %s1803_s22 = sphi %s1901_s22, %s2270_s22   ;;  %s1799_s21 = sphi %s1899_s21, %s2269_s21  }
  0x17   : > { %2239 = sst [smem:[#allocation25_spill]] %s1815_s25  ;;  %p1251_p0 = scmp.ge.s32.totalorder %s1819_s26, 1 }
  0x18   : > { %2240 = sst [smem:[#allocation26_spill]] %s1819_s26  ;;  %p72_p1 = scmp.eq.s32.totalorder %s1930_s27, 0 }
  0x19   : > { %p358_p2 = scmp.lt.s32.totalorder %s1819_s26, 3  ;;  %s2241_s3 = sld [smem:[#allocation32_spill]] }
  0x1a   : > { %s1821_s14 = smov [#allocation9]   ;;  %p1256_p6 = scmp.ge.s32.totalorder %s1819_s26, 2 }
  0x1b   : > { %p1938_p3 = pnand %p1251_p0, %p358_p2  ;;  %s371_s15 = sshll.u32 %s1821_s14, 4  ;;  %s372_s15 = int_to_ptr.vmem [resolvable:$true] %s371_s15 }
  0x1c   : > { %s2244_s7 = sld [smem:[#allocation34_spill]]  ;;  %s2216_s20 = smov 64  }
  0x1d   : > { %p1362_p4 = pneg %p1938_p3  ;;  %s2218_s28 = smov 4  }
  0x1e   : > { %s1824_s29 = smov [#allocation12]   ;;  %s1250_s17 = sadd.s32 4294967294, %s1819_s26  }
  0x1f   : > { %s369_s30 = sshll.u32 %s2241_s3, 4  ;;  %p1946_p5 = pnand %p1362_p4, %p72_p1  ;;  %s370_s30 = int_to_ptr.hbm [resolvable:$true] %s369_s30 }
  0x20   : > { %s405_s14 = sshll.u32 %s1824_s29, 4  ;;  %s49_s18 = sadd.s32 1, %s1815_s25  ;;  %s406_s14 = int_to_ptr.vmem [resolvable:$true] %s405_s14 }
  0x21   : > { %1365 = dma.hbm_to_vmem [thread:$0]  (!%p1946_p5), %s370_s30, 256, %s372_s15, [#allocation10], %s2216_s20, %s2216_s20, %s2218_s28  }
  0x22   : > { %s403_s19 = sshll.u32 %s2244_s7, 4  ;;  %p51_p7 = scmp.ge.s32.totalorder %s49_s18, 2  ;;  %s404_s19 = int_to_ptr.hbm [resolvable:$true] %s403_s19 }
  0x23   : > { %1371 = dma.hbm_to_vmem [thread:$0]  (!%p1946_p5), %s404_s19, 256, %s406_s14, [#allocation13], %s2216_s20, %s2216_s20, %s2218_s28  }
  0x24   : > { %s58_s3 = sadd.s32 1, %s1807_s23  ;;  %p65_p8 = scmp.ne.s32.totalorder %s1807_s23, %s1803_s22 }
  0x25   : > { %p66_p9 = scmp.eq.s32.totalorder %s1819_s26, 0  ;;  %s2273_s18 = smov (%p51_p7, %s49_s18), 0 }
  0x26   : > { %2245 = sst [smem:[#allocation27_spill]] %s2273_s18  ;;  %p71_p11 = scmp.ne.s32.totalorder %s1803_s22, %s1799_s21 }
  0x27   : > { %p1972_p10 = por %p66_p9, %p65_p8  ;;  %s53_s15 = ssub.s32 %s1815_s25, %s2273_s18 }
  0x28   : > { %p317_p12 = scmp.eq.s32.totalorder %s1930_s27, 1  ;;  %p56_p13 = scmp.eq.s32.totalorder %s53_s15, 0 }
  0x29   : > { %p1983_p0 = por %p72_p1, %p71_p11  ;;  %p323_p4 = scmp.eq.s32.totalorder %s1250_s17, 1 }
  0x2a   : > { %p1987_p2 = por %p317_p12, %p65_p8  ;;  %p1396_p9 = scmp.lt.s32.totalorder %s1819_s26, 2 }
  0x2b   : > { %s1992_s14 = scalar_select %p56_p13, %s1807_s23, %s58_s3  }
  0x2c   : > { %p1994_p7 = por %p323_p4, %p71_p11  ;;  %s2224_s28 = sand.u32 1, %s1807_s23  }
  0x2d   : > { %2249 = sst [smem:[#allocation28_spill]] %s1992_s14  ;;  %s2001_s7 = sshll.u32 %s1815_s25, 2 }
  0x2e   : > { %s2250_s20 = scalar_select %p1994_p7, 1, 0 }
  0x2f   : > { %s2005_s15 = sshll.u32 %s2224_s28, 2  ;;  %p2009_p8 = pnand %p1396_p9, %p1972_p10 }
  0x30   : > { %2251 = sst [smem:[#allocation29_spill]] %s2250_s20  ;;  %s459_s3 = sand.u32 1, %s1819_s26  }
  0x31   : > { %s2253_s1 = sld [smem:[#allocation31_spill]]  ;;  %s463_s21 = scalar_lea.vmem [#allocation6], %s2005_s15 }
  0x32   : > { %s471_s25 = sshll.u32 %s463_s21, 4  ;;  %s2254_s5 = sld [smem:[#allocation33_spill]]  ;;  %s472_s25 = int_to_ptr.vmem [resolvable:$true] %s471_s25 }
  0x33   : > { %s460_s12 = scalar_lea.sflag [#allocation7], %s459_s3  ;;  %s1825_s26 = smov [#allocation11]  }
  0x34   : > { %s388_s14 = sshll.u32 %s1825_s26, 4  ;;  %s2255_s9 = sld [smem:[#allocation35_spill]]  ;;  %s389_s14 = int_to_ptr.vmem [resolvable:$true] %s388_s14 }
  0x35   : > { %s2257_s28 = smov 64   ;;  %s1826_s3 = smov [#allocation14]  }
  0x36   : > { %s2258_s0 = sld [smem:[#allocation30_spill]]  ;;  %s443_s17 = scalar_lea.vmem [#allocation3], %s2005_s15 }
  0x37   : > { %s467_s20 = scalar_lea.hbm %s2253_s1, %s2001_s7 }
  0x38   : > { %s469_s10 = sshll.u32 %s467_s20, 4  ;;  %s386_s11 = sshll.u32 %s2254_s5, 4  ;;  %s470_s10 = int_to_ptr.hbm [resolvable:$true] %s469_s10  ;;  %s387_s11 = int_to_ptr.hbm [resolvable:$true] %s386_s11 }
  0x39   : > { %1381 = dma.hbm_to_vmem [thread:$0]  (!%p2009_p8), %s470_s10, 64, %s472_s25, %s460_s12  }
  0x3a   : > { %s420_s21 = sshll.u32 %s2255_s9, 4  ;;  %s2256_s20 = smov 4   ;;  %s421_s21 = int_to_ptr.hbm [resolvable:$true] %s420_s21 }
  0x3b   : > { %1368 = dma.hbm_to_vmem [thread:$0]  (!%p1946_p5), %s387_s11, 256, %s389_s14, [#allocation10], %s2257_s28, %s2257_s28, %s2256_s20  }
  0x3c   : > { %s422_s10 = sshll.u32 %s1826_s3, 4  ;;  %s448_s26 = scalar_lea.hbm %s2258_s0, %s2001_s7  ;;  %s423_s10 = int_to_ptr.vmem [resolvable:$true] %s422_s10 }
  0x3d   : > { %1374 = dma.hbm_to_vmem [thread:$0]  (!%p1946_p5), %s421_s21, 256, %s423_s10, [#allocation13], %s2257_s28, %s2257_s28, %s2256_s20  }
  0x3e   : > { %s450_s1 = sshll.u32 %s448_s26, 4  ;;  %s452_s5 = sshll.u32 %s443_s17, 4  ;;  %s451_s1 = int_to_ptr.hbm [resolvable:$true] %s450_s1  ;;  %s453_s5 = int_to_ptr.vmem [resolvable:$true] %s452_s5 }
  0x3f   : > { %s2259_s9 = sand.u32 1, %s1807_s23   ;;  %s486_s25 = scalar_lea.hbm %s2205_s2, %s2001_s7 }
  0x40   : > { %s440_s11 = scalar_lea.sflag [#allocation4], %s2259_s9  ;;  %s488_s30 = sshll.u32 %s486_s25, 4  ;;  %s489_s30 = int_to_ptr.hbm [resolvable:$true] %s488_s30 }
  0x41   : > { %1378 = dma.hbm_to_vmem [thread:$0]  (!%p2009_p8), %s451_s1, 64, %s453_s5, %s440_s11  }
  0x42   : > { %s482_s0 = scalar_lea.vmem [#allocation8], %s2005_s15  ;;  %499 = sbr.rel (%p1938_p3) target bundleno = 1159 (0x487), region = 64 }
  0x43   : > { %s490_s16 = sshll.u32 %s482_s0, 4  ;;  %s2056_s21 = sand.u32 (!%p1938_p3), 1, %s1803_s22   ;;  %s491_s16 = int_to_ptr.vmem [resolvable:$true] %s490_s16 }
  0x44   : > { %1384 = dma.hbm_to_vmem [thread:$0]  (!%p2009_p8), %s489_s30, 64, %s491_s16, %s460_s12  }
  0x45   : > { %s2059_s5 = sshll.u32 (!%p1938_p3), %s2056_s21, 2  ;;  %s502_s7 = scalar_lea.sflag (!%p1938_p3), [#allocation4], %s2056_s21 }
  0x46   : > { %s505_s9 = scalar_lea.vmem (!%p1938_p3), [#allocation3], %s2059_s5 }
  0x47   : > { %1774 = dma.done.wait (%p1983_p0), %s502_s7, 64  }
  0x48   : > { %1776 = vsyncadd (%p1983_p0), %s502_s7, 4294967232  ;;  %s511_s0 = sand.u32 1, %s1930_s27   ;;  %s515_s13 = scalar_lea.vmem [#allocation6], %s2059_s5 }
  0x49   : > { %s512_s12 = scalar_lea.sflag [#allocation7], %s511_s0 }
  0x4a   : > { %1778 = dma.done.wait (%p1983_p0), %s512_s12, 128  }
  0x4b   : > { %1780 = vsyncadd (%p1983_p0), %s512_s12, 4294967168  ;;  %s525_s18 = scalar_lea.vmem [#allocation8], %s2059_s5 }
  0x4c   : > { %1782 = dma.done.wait (%p72_p1), [#allocation10], 512  }
  0x4d   : > { %1784 = vsyncadd (%p72_p1), [#allocation10], 4294966784 }
  0x4e   : > { %1786 = dma.done.wait (%p72_p1), [#allocation13], 512  }
  0x4f   : > { %1788 = vsyncadd (%p72_p1), [#allocation13], 4294966784  ;;  %v1328_v0 = vld [vmem:[#allocation9 + $0x8] sm:$0xff]  ;;  %v1330_v1 = vld [vmem:[#allocation11 + $0x8] sm:$0xff]  ;;  %vm626_vm0 = vcmask 261120   ;;  %vm719_vm1 = vcmask 64512  }
  0x50   : > { %v1327_v2 = vld [vmem:[#allocation9] sm:$0xff]  ;;  %636 = vmatpush.bf16.msra.mxu0 %v1328_v0  ;;  %672 = vmatpush.bf16.msra.mxu1 %v1330_v1  ;;  %v1329_v3 = vld [vmem:[#allocation11] sm:$0xff]  ;;  %v603_v4 = vld [vmem:[%s505_s9] sm:$0xf]  ;;  %s1827_s28 = smov 112   ;;  %s1828_s10 = smov 120  }
  0x51   : > { %v604_v5 = vld [vmem:[%s515_s13] sm:$0xf]  ;;  %v1463_v6 = vld [vmem:[%s2207_s4] ss:$0 sm:$0xff]  ;;  %s1829_s26 = smov 104   ;;  %v1332_v22 = vld [vmem:[#allocation12 + $0x8] sm:$0xff] }
  0x52   : > { %v1464_v7 = vld [vmem:[%s2209_s6] ss:$0 sm:$0xff]  ;;  %708 = vmatpush.bf16.msra.mxu2 %v1332_v22  ;;  %v605_v36 = vld [vmem:[%s525_s18] sm:$0xf]  ;;  %vm755_vm2 = vcmask 1043456   ;;  %s1272_s11 = sshll.u32 %s2056_s21, 5 }
  0x53   : > { %v1331_v35 = vld [vmem:[#allocation12] sm:$0xff]  ;;  %s2119_s14 = scalar_lea.vmem [#allocation16], %s1272_s11  ;;  %s1830_s3 = smov 8   ;;  %vm844_vm3 = vcmask 130112   ;;  %vm908_vm4 = vcmask 195712   ;;  %vm972_vm5 = vcmask 261312  }
  0x54   : > { %637 = vmatpush.bf16.msra.mxu0 %v1327_v2  ;;  %673 = vmatpush.bf16.msra.mxu1 %v1329_v3  ;;  %v1465_v51 = vld [vmem:[%s2211_s8] ss:$0 sm:$0xff]  ;;  %s1831_s25 = smov 24   ;;  %s1832_s30 = smov 16  }
  0x55   : > { %s1335_s16 = sshll.u32 %s1811_s24, 5  ;;  %s2260_s9 = sld [smem:[#allocation38_spill]] }
  0x56   : > { %709 = vmatpush.bf16.msra.mxu2 %v1331_v35  ;;  %s1047_s12 = sshll.u32 %s2119_s14, 4  ;;  %s1019_s18 = scalar_lea.sflag [#allocation17], %s2056_s21  ;;  %s1048_s12 = int_to_ptr.vmem [resolvable:$true] %s1047_s12 }
  0x57   : > { %1281 = vmatmul.msk.bf16.vlgmr.msra.gmra.mxu0 %vm626_vm0, %v603_v4  ;;  %1290 = vmatmul.msk.bf16.vlgmr.msra.gmra.mxu1 %vm626_vm0, %v604_v5 }
  0x59   : > { %1299 = vmatmul.msk.bf16.vlgmr.msra.gmra.mxu2 %vm626_vm0, %v605_v36 }
  0x5b   : > { %s1046_s0 = scalar_lea.hbm %s2260_s9, %s1335_s16 }
  0x5c   : > { %s1049_s13 = sshll.u32 %s1046_s0, 4  ;;  %s1050_s13 = int_to_ptr.hbm [resolvable:$true] %s1049_s13 }
  0x5d   : > { %s1707_s19 = sshra.s32 %s1050_s13, 4  ;;  %s1708_s19 = int_to_ptr.hbm [resolvable:$true] %s1707_s19 }
  0x5e   : > { %s1709_s15 = scalar_lea.hbm %s1708_s19, 32  ;;  %p1714_p10 = scmp.lt.s32.totalorder %s1708_s19, %s2260_s9 }
  0x5f   : > { %p1710_p1 = scmp.ne.s32.totalorder %s1708_s19, %s1709_s15 }
  0x61   : > { %p1711_p3 = pnand %p1710_p1, %p1987_p2 }
  0x63   : > { %p1712_p5 = pneg %p1711_p3 }
  0xd4   : > { %v639_v8 = vpop.f32.mrf.mxu0  ;;  %v675_v9 = vpop.f32.mrf.mxu1 }
  0xd5   : > { %v640_v10 = vadd.f32 %v1463_v6, %v639_v8  ;;  %v676_v11 = vadd.f32 %v1464_v7, %v675_v9 }
  0xd7   : > { %v715_v12 = vmul.f32 0.35355338, %v640_v10  ;;  %v717_v13 = vpack.c.bf16 %v676_v11, %v676_v11 }
  0xd9   : > { %v716_v14 = vpack.c.bf16 %v715_v12, %v715_v12  ;;  %v779_v15 = vunpack.c.l.b16 %v717_v13  ;;  %v724_v16 = vsel %vm719_vm1, %v717_v13, 0 }
  0xda   : > { %733 = vmatpush.bf16.xpose.msra.mxu3 %v724_v16 }
  0xdb   : > { %v774_v17 = vunpack.c.l.b16 %v716_v14  ;;  %v780_v18 = vpack.c.b16 %v779_v15, %v779_v15 }
  0xdc   : > { %v641_v19 = vpop.f32.mrf.mxu0  ;;  %v677_v20 = vpop.f32.mrf.mxu1 }
  0xdd   : > { %848 = vrot.lane.b32.xlu1 %v780_v18, %s1827_s28  ;;  %781 = vrot.lane.b32.xlu0 %v780_v18, %s1828_s10  ;;  %v775_v21 = vpack.c.b16 %v774_v17, %v774_v17  ;;  %v711_v52 = vpop.f32.mrf.mxu2 }
  0xde   : > { %v712_v53 = vadd.f32 %v1465_v51, %v711_v52 }
  0xdf   : > { %846 = vrot.lane.b32.xlu2 %v775_v21, %s1827_s28 }
  0xe0   : > { %v718_v54 = vpack.c.bf16 %v712_v53, %v712_v53 }
  0xe1   : > { %1300 = vmatmul.msk.bf16.vlgmr.msra.gmra.mxu3 %vm719_vm1, %v716_v14 }
  0xe2   : > { %v757_v55 = vsel %vm755_vm2, %v718_v54, 0  ;;  %v817_v56 = vunpack.c.l.b16 %v718_v54 }
  0xe3   : > { %766 = vmatpush.bf16.msrb.mxu0 %v757_v55 }
  0xe4   : > { %v818_v58 = vpack.c.b16 %v817_v56, %v817_v56 }
  0xe5   : > { %912 = vrot.lane.b32.xlu1 %v780_v18, %s1829_s26  ;;  %776 = vrot.lane.b32.xlu0 %v775_v21, %s1828_s10  ;;  %v713_v57 = vpop.f32.mrf.mxu2 }
  0xe7   : > { %910 = vrot.lane.b32.xlu2 %v775_v21, %s1829_s26 }
 0x139   : > { %v847_v27 = vpop.permute.xlu2 %846 }
 0x141   : > { %v911_v33 = vpop.permute.xlu2 %910 }
 0x14f   : > { %v849_v23 = vpop.permute.xlu1 %848  ;;  %v782_v24 = vpop.permute.xlu0 %781 }
 0x150   : > { %v787_v25 = vsel %vm719_vm1, %v782_v24, 0  ;;  %v854_v26 = vsel %vm719_vm1, %v849_v23, 0 }
 0x151   : > { %796 = vmatpush.bf16.xpose.msrb.mxu1 %v787_v25  ;;  %863 = vmatpush.bf16.xpose.msrb.mxu3 %v854_v26 }
 0x157   : > { %v913_v28 = vpop.permute.xlu1 %912  ;;  %v777_v29 = vpop.permute.xlu0 %776 }
 0x158   : > { %v918_v30 = vsel %vm719_vm1, %v913_v28, 0  ;;  %1302 = vmatmul.msk.bf16.vlgmr.msrb.gmra.mxu1 %vm719_vm1, %v777_v29  ;;  %1305 = vmatmul.msk.bf16.vlgmr.msrb.gmra.mxu3 %vm719_vm1, %v847_v27 }
 0x159   : > { %927 = vmatpush.bf16.xpose.msra.mxu1 %v918_v30 }
 0x164   : > { %v735_v31 = vpop.f32.mrf.mxu3 }
 0x165   : > { %v739_v32 = vsel %vm719_vm1, %v735_v31, -inf }
 0x166   : > { %740 = vmax.xlane.f32.xlu1 %v739_v32 }
 0x168   : > { %1308 = vmatmul.msk.bf16.vlgmr.msra.gmra.mxu1 %vm719_vm1, %v911_v33 }
 0x16c   : > { %v737_v34 = vpop.f32.mrf.mxu3 }
 0x1d5   : > { %v798_v37 = vpop.f32.mrf.mxu1 }
 0x1d6   : > { %v802_v38 = vsel %vm719_vm1, %v798_v37, -inf }
 0x1d7   : > { %803 = vmax.xlane.f32.xlu0 %v802_v38 }
 0x1d9   : > { %v741_v39 = vpop.xlane.xlu1 %740 }
 0x1da   : > { %v742_v40 = vsub.f32 %v735_v31, %v741_v39 }
 0x1db   : > { %v865_v41 = vpop.f32.mrf.mxu3 }
 0x1dc   : > { %v743_v42 = vmul.f32 1.442695, %v742_v40  ;;  %v869_v50 = vsel %vm719_vm1, %v865_v41, -inf }
 0x1dd   : > { %v800_v43 = vpop.f32.mrf.mxu1 }
 0x1de   : > { %1467 = vpow2.f32 %v743_v42  ;;  %v1333_v42 = vld [vmem:[#allocation14] sm:$0xff] }
 0x1e3   : > { %v867_v44 = vpop.f32.mrf.mxu3 }
 0x1e4   : > { %v1468_v45 = vpop.eup %1467 }
 0x1e5   : > { %v929_v46 = vpop.f32.mrf.mxu1  ;;  %v745_v47 = vsel %vm719_vm1, %v1468_v45, 0.0 }
 0x1e6   : > { %746 = vadd.xlane.f32.xlu1 %v745_v47  ;;  %v933_v48 = vsel %vm719_vm1, %v929_v46, -inf }
 0x1e7   : > { %934 = vmax.xlane.f32.xlu2 %v933_v48 }
 0x1ed   : > { %v931_v49 = vpop.f32.mrf.mxu1 }
 0x1ef   : > { %870 = vmax.xlane.f32.xlu2 %v869_v50 }
 0x207   : > { %819 = vrot.lane.b32.xlu2 %v818_v58, %s1828_s10 }
 0x24a   : > { %v804_v59 = vpop.xlane.xlu0 %803 }
 0x24b   : > { %v805_v60 = vsub.f32 %v798_v37, %v804_v59 }
 0x24d   : > { %v806_v61 = vmul.f32 1.442695, %v805_v60 }
 0x24f   : > { %1469 = vpow2.f32 %v806_v61 }
 0x255   : > { %v1470_v62 = vpop.eup %1469 }
 0x256   : > { %v808_v63 = vsel %vm719_vm1, %v1470_v62, 0.0 }
 0x257   : > { %809 = vadd.xlane.f32.xlu0 %v808_v63 }
 0x259   : > { %v747_v0 = vpop.xlane.xlu1 %746 }
 0x25a   : > { %1471 = vrcp.f32 %v747_v0  ;;  %v935_v1 = vpop.xlane.xlu2 %934 }
 0x25b   : > { %v936_v2 = vsub.f32 %v929_v46, %v935_v1 }
 0x25d   : > { %v937_v3 = vmul.f32 1.442695, %v936_v2 }
 0x25f   : > { %1473 = vpow2.f32 %v937_v3 }
 0x260   : > { %v1472_v4 = vpop.eup %1471 }
 0x261   : > { %v749_v5 = vmul.f32 %v1472_v4, %v1468_v45 }
 0x262   : > { %v871_v6 = vpop.xlane.xlu2 %870 }
 0x263   : > { %750 = vst.msk [vmem:[%s2119_s14] sm:$0xff] %vm719_vm1, %v749_v5  ;;  %v872_v7 = vsub.f32 %v865_v41, %v871_v6  ;;  %v751_v8 = vpack.c.bf16 %v749_v5, %v749_v5  ;;  %v1334_v41 = vld [vmem:[#allocation14 + $0x8] sm:$0xff] }
 0x264   : > { %1005 = vmatpush.bf16.msra.mxu3 %v1334_v41 }
 0x265   : > { %v1474_v9 = vpop.eup %1473  ;;  %v873_v10 = vmul.f32 1.442695, %v872_v7  ;;  %1301 = vmatmul.msk.bf16.vlgmr.msrb.gmra.mxu0 %vm719_vm1, %v751_v8 }
 0x266   : > { %v939_v11 = vsel %vm719_vm1, %v1474_v9, 0.0 }
 0x267   : > { %1475 = vpow2.f32 %v873_v10  ;;  %940 = vadd.xlane.f32.xlu0 %v939_v11 }
 0x268   : > { %1006 = vmatpush.bf16.msra.mxu3 %v1333_v42 }
 0x26a   : > { %v820_v14 = vpop.permute.xlu2 %819 }
 0x26b   : > { %v825_v15 = vsel %vm755_vm2, %v820_v14, 0 }
 0x26c   : > { %834 = vmatpush.bf16.msrb.mxu2 %v825_v15 }
 0x26d   : > { %v1476_v12 = vpop.eup %1475 }
 0x26e   : > { %v875_v13 = vsel %vm719_vm1, %v1476_v12, 0.0 }
 0x26f   : > { %876 = vadd.xlane.f32.xlu1 %v875_v13 }
 0x27b   : > { %947 = vrot.lane.b32.xlu0 %v818_v58, %s1829_s26 }
 0x288   : > { %883 = vrot.lane.b32.xlu1 %v818_v58, %s1827_s28  ;;  %s1713_s28 = scalar_lea.hbm %s2260_s9, 64 }
 0x289   : > { %p1715_p11 = scmp.lt.s32.totalorder %s1713_s28, %s1709_s15 }
 0x28b   : > { %p1716_p12 = por %p1715_p11, %p1714_p10 }
 0x28d   : > { %p1717_p13 = pnand %p1716_p12, %p1712_p5 }
 0x2ca   : > { %v810_v16 = vpop.xlane.xlu0 %809 }
 0x2cb   : > { %1477 = vrcp.f32 %v810_v16 }
 0x2d1   : > { %v1478_v17 = vpop.eup %1477 }
 0x2d2   : > { %v812_v18 = vmul.f32 %v1478_v17, %v1470_v62 }
 0x2d4   : > { %1303 = vst.msk [vmem:[%s2119_s14 + $0x8] sm:$0xff] %vm719_vm1, %v812_v18  ;;  %v815_v19 = vpack.c.bf16 %v812_v18, %v812_v18 }
 0x2d6   : > { %1304 = vmatmul.msk.bf16.vlgmr.msrb.gmra.mxu2 %vm719_vm1, %v815_v19 }
 0x2da   : > { %v941_v20 = vpop.xlane.xlu0 %940 }
 0x2db   : > { %1479 = vrcp.f32 %v941_v20 }
 0x2e1   : > { %v1480_v21 = vpop.eup %1479 }
 0x2e2   : > { %v943_v22 = vmul.f32 %v1480_v21, %v1474_v9  ;;  %v768_v23 = vpop.f32.mrf.mxu0  ;;  %v877_v24 = vpop.xlane.xlu1 %876 }
 0x2e3   : > { %772 = vst.msk [vmem:[#allocation2] sm:$0xff] %vm719_vm1, %v768_v23  ;;  %1481 = vrcp.f32 %v877_v24 }
 0x2e4   : > { %1309 = vst.msk [vmem:[%s2119_s14 + $0x18] sm:$0xff] %vm719_vm1, %v943_v22  ;;  %v946_v30 = vpack.c.bf16 %v943_v22, %v943_v22 }
 0x2e9   : > { %v1482_v25 = vpop.eup %1481 }
 0x2ea   : > { %v879_v26 = vmul.f32 %v1482_v25, %v1476_v12  ;;  %v770_v27 = vpop.f32.mrf.mxu0 }
 0x2ec   : > { %1306 = vst.msk [vmem:[%s2119_s14 + $0x10] sm:$0xff] %vm719_vm1, %v879_v26  ;;  %v882_v33 = vpack.c.bf16 %v879_v26, %v879_v26 }
 0x2ed   : > { %v948_v28 = vpop.permute.xlu0 %947 }
 0x2ee   : > { %v953_v29 = vsel %vm755_vm2, %v948_v28, 0 }
 0x2ef   : > { %962 = vmatpush.bf16.msra.mxu2 %v953_v29 }
 0x2f2   : > { %1310 = vmatmul.msk.bf16.vlgmr.msra.gmra.mxu2 %vm719_vm1, %v946_v30 }
 0x2fa   : > { %v884_v31 = vpop.permute.xlu1 %883 }
 0x2fb   : > { %v889_v32 = vsel %vm755_vm2, %v884_v31, 0 }
 0x2fc   : > { %898 = vmatpush.bf16.msra.mxu0 %v889_v32 }
 0x2ff   : > { %1307 = vmatmul.msk.bf16.vlgmr.msra.gmra.mxu0 %vm719_vm1, %v882_v33 }
 0x359   : > { %v836_v34 = vpop.f32.mrf.mxu2 }
 0x35a   : > { %841 = vrot.lane.b32.xlu2 %v836_v34, %s1830_s3 }
 0x361   : > { %v838_v35 = vpop.f32.mrf.mxu2 }
 0x375   : > { %v964_v36 = vpop.f32.mrf.mxu2 }
 0x376   : > { %969 = vrot.lane.b32.xlu2 %v964_v36, %s1831_s25 }
 0x37c   : > { %v900_v37 = vpop.f32.mrf.mxu0 }
 0x37d   : > { %905 = vrot.lane.b32.xlu0 %v900_v37, %s1832_s30  ;;  %v966_v38 = vpop.f32.mrf.mxu2 }
 0x384   : > { %v902_v39 = vpop.f32.mrf.mxu0 }
 0x3b4   : > { %v842_v40 = vpop.permute.xlu2 %841 }
 0x3b5   : > { %845 = vst.msk [vmem:[#allocation2] sm:$0xff] %vm844_vm3, %v842_v40 }
 0x3d0   : > { %v970_v44 = vpop.permute.xlu2 %969 }
 0x3ef   : > { %v906_v43 = vpop.permute.xlu0 %905 }
 0x3f0   : > { %909 = vst.msk [vmem:[#allocation2] sm:$0xff] %vm908_vm4, %v906_v43 }
 0x3f1   : > { %973 = vst.msk [vmem:[#allocation2] sm:$0xff] %vm972_vm5, %v970_v44 }
 0x3f8   : > { %v974_v45 = vld [vmem:[#allocation2] sm:$0xff] }
 0x3f9   : > { %v975_v46 = vpack.c.bf16 %v974_v45, %v974_v45 }
 0x3fb   : > { %1319 = vmatmul.msk.bf16.vlgmr.msra.gmra.mxu3 %vm626_vm0, %v975_v46 }
 0x3fc   : > { %1720 = shalt.err (!%p1717_p13)
}
 0x3fd   : > { %s1833_s1 = smov 128   ;;  %s1322_s17 = sshll.u32 %s1811_s24, 3 }
 0x3fe   : > { %1359 = dma.vmem_to_hbm [thread:$0]  (%p1987_p2), %s1048_s12, 512, %s1050_s13, %s1019_s18, %s1833_s1, %s1833_s1, %s1830_s3  }
 0x3ff   : > { %s1271_s11 = sshll.u32 %s2056_s21, 3  ;;  %s2261_s30 = sld [smem:[#allocation37_spill]] }
 0x400   : > { %s2262_s0 = sld [smem:[#allocation36_spill]]  ;;  %s594_s19 = scalar_lea.vmem [#allocation15], %s1271_s11 }
 0x401   : > { %s1032_s15 = sshll.u32 %s594_s19, 4  ;;  %s1014_s24 = scalar_lea.sflag [#allocation5], %s2056_s21  ;;  %s1033_s15 = int_to_ptr.vmem [resolvable:$true] %s1032_s15 }
 0x405   : > { %s1030_s16 = scalar_lea.hbm %s2261_s30, %s1322_s17  ;;  %s1741_s20 = scalar_lea.hbm %s2261_s30, 16 }
 0x406   : > { %v1466_v47 = vld [vmem:[%s2262_s0] ss:$0 sm:$0xff]  ;;  %s1034_s27 = sshll.u32 %s1030_s16, 4  ;;  %s1035_s27 = int_to_ptr.hbm [resolvable:$true] %s1034_s27 }
 0x407   : > { %s1735_s3 = sshra.s32 %s1035_s27, 4  ;;  %s1736_s3 = int_to_ptr.hbm [resolvable:$true] %s1735_s3 }
 0x408   : > { %s1737_s12 = scalar_lea.hbm %s1736_s3, 8  ;;  %p1742_p8 = scmp.lt.s32.totalorder %s1736_s3, %s2261_s30 }
 0x409   : > { %p1738_p0 = scmp.ne.s32.totalorder %s1736_s3, %s1737_s12  ;;  %p1743_p1 = scmp.lt.s32.totalorder %s1741_s20, %s1737_s12 }
 0x40b   : > { %p1739_p4 = pnand %p1738_p0, %p1987_p2  ;;  %p1744_p3 = por %p1743_p1, %p1742_p8 }
 0x40d   : > { %p1740_p9 = pneg %p1739_p4 }
 0x40f   : > { %p1745_p5 = pnand %p1744_p3, %p1740_p9 }
 0x47e   : > { %v1008_v48 = vpop.f32.mrf.mxu3 }
 0x47f   : > { %v1009_v49 = vadd.f32 %v1466_v47, %v1008_v48 }
 0x481   : > { %1012 = vst.msk [vmem:[%s594_s19] sm:$0xff] %vm626_vm0, %v1009_v49 }
 0x482   : > { %1748 = shalt.err (!%p1745_p5)
}
 0x483   : > { %1358 = dma.vmem_to_hbm [thread:$0]  (%p1987_p2), %s1033_s15, 128, %s1035_s27, %s1014_s24  }
 0x486   : > { %v1010_v50 = vpop.f32.mrf.mxu3 }
 0x487 PF: > { %s2263_s21 = sld [smem:[#allocation24_spill]]  ;;  %p1386_p10 = pnand %p1256_p6, %p1994_p7 }
 0x488   : > { %s2265_s1 = sld [smem:[#allocation26_spill]] }
 0x489   : > { %p1387_p11 = pneg %p1386_p10 }
 0x48d   : > { %s1064_s17 = sand.u32 1, %s2263_s21  }
 0x48e   : > { %s1065_s11 = scalar_lea.sflag [#allocation5], %s1064_s17 }
 0x48f   : > { %1790 = dma.done.wait (%p1387_p11), %s1065_s11, 128  }
 0x490   : > { %1792 = vsyncadd (%p1387_p11), %s1065_s11, 4294967168  ;;  %s1075_s14 = scalar_lea.sflag [#allocation17], %s1064_s17 }
 0x491   : > { %1794 = dma.done.wait (%p1387_p11), %s1075_s14, 512  }
 0x492   : > { %1796 = vsyncadd (%p1387_p11), %s1075_s14, 4294966784  ;;  %s37_s26 = sadd.s32 1, %s2265_s1   ;;  %s2266_s29 = sld [smem:[#allocation28_spill]] }
 0x493   : > { %p34_p12 = scmp.ge.s32.totalorder %s37_s26, 4   ;;  %s2267_s24 = sld [smem:[#allocation25_spill]] }
 0x494   : > { %s2268_s25 = sld [smem:[#allocation27_spill]]  ;;  %s2269_s21 = smov %s1803_s22 }
 0x495   : > { %s2270_s22 = smov %s1807_s23  ;;  %36 = sbr.rel (!%p34_p12) target bundleno = 22 (0x16), region = 169 }
 0x498   : > { %s2271_s23 = smov %s2266_s29 }
 0x49a   :  { %1081 = vsyncpa [#allocation4], 1 }
 0x49b   :  { %1083 = vsyncpa [#allocation4 + $0x1], 1 }
 0x49c   :  { %1084 = vsyncpa [#allocation7], 1 }
 0x49d   :  { %1086 = vsyncpa [#allocation7 + $0x1], 1 }
 0x49e   :  { %1087 = vsyncpa [#allocation10], 1 }
 0x49f   :  { %1088 = vsyncpa [#allocation13], 1 }
 0x4a0   :  { %1089 = vsyncpa [#allocation5], 1 }
 0x4a1   :  { %1091 = vsyncpa [#allocation5 + $0x1], 1 }
 0x4a2   :  { %1092 = vsyncpa [#allocation17], 1 }
 0x4a3   :  { %1094 = vsyncpa [#allocation17 + $0x1], 1 }

</bundles_post_ra>
